<compile_context>
chip_gen: v6e
topology: v6e:2x2x1
jax: 0.10.0
libtpu: 0.0.40
codegen_flags: <defaults>
</compile_context>

<pallas_src>
import numpy as np
import jax
import jax.numpy as jnp
from jax.experimental import pallas as pl
from jax.experimental.pallas import tpu as pltpu

PAD = 0
LN_EPS = 1e-3      # custom LayerNormalization eps used in the reference repo
NEG_BIG = -1e30    # additive key-pad bias (stands in for masked_fill(-inf))


# ----------------------------------------------------------------------------
# sinusoidal positional encoding table (position_encoding_init)
# ----------------------------------------------------------------------------
def position_encoding_init(n_position, d_pos_vec):
    pe = np.array(
        [[pos / np.power(10000, 2 * (j // 2) / d_pos_vec) for j in range(d_pos_vec)]
         if pos != 0 else np.zeros(d_pos_vec)
         for pos in range(n_position)],
        dtype=np.float32,
    )
    pe[1:, 0::2] = np.sin(pe[1:, 0::2])
    pe[1:, 1::2] = np.cos(pe[1:, 1::2])
    return jnp.asarray(pe, dtype=jnp.float32)


# ----------------------------------------------------------------------------
# fused Pallas kernel: the full encoder layer stack (attention + FFN, all layers)
# ----------------------------------------------------------------------------
def make_encoder_stack_call(B, S, D, H, DK, DV, DI, L, nbt):
    """grid = (batch_tiles, layer); batch tiles 'parallel', layer 'arbitrary'
    (the activation for the current batch tile is carried in a VMEM scratch)."""
    assert B % nbt == 0, "batch must divide evenly into batch tiles"
    Bt = B // nbt          # batch elements per grid block
    N = Bt * S             # flattened (batch-tile * seq) rows for the big matmuls
    QW = H * DK            # fused Q (and K) lane width
    VW = H * DV            # fused V lane width / concat-head width

    def layer_norm(z, g, b):
        # reference LayerNormalization: (z - mu) / (std_unbiased + eps) * g + b
        mu = jnp.mean(z, axis=-1, keepdims=True)
        var = jnp.sum((z - mu) ** 2, axis=-1, keepdims=True) * (1.0 / (D - 1))
        return (z - mu) / (jnp.sqrt(var) + LN_EPS) * g + b

    def kernel(x_ref, bias_ref, wqkv_ref, wo_ref, w1_ref, w2_ref, vec_ref, b1_ref,
               out_ref, attn_ref, xcur):
        layer = pl.program_id(1)

        @pl.when(layer == 0)
        def _():
            xcur[...] = x_ref[...].reshape(N, D)     # load embeddings once per batch tile

        x = xcur[...]                                # (N, D) carried activation, f32
        vec = vec_ref[0]                             # (6, D): bo, g1, be1, b2, g2, be2

        # ---- fused Q|K|V projection: one lane-dense MXU matmul (bf16 in, f32 acc) ----
        xb = x.astype(jnp.bfloat16)
        qkv = jnp.dot(xb, wqkv_ref[0], preferred_element_type=jnp.float32)  # (N, 2QW+VW)
        q_all = qkv[:, :QW]
        k_all = qkv[:, QW:2 * QW]
        v_all = qkv[:, 2 * QW:]

        bias = bias_ref[...]                         # (Bt, 1, S) additive key-pad bias
        ctx_parts = []
        for b in range(Bt):                          # Bt is small & static (1 in demo)
            r0 = b * S
            q_b = jnp.stack([q_all[r0:r0 + S, h * DK:(h + 1) * DK] for h in range(H)], 0)
            k_b = jnp.stack([k_all[r0:r0 + S, h * DK:(h + 1) * DK] for h in range(H)], 0)
            v_b = jnp.stack([v_all[r0:r0 + S, h * DV:(h + 1) * DV] for h in range(H)], 0)

            # scores: (H, S, S); 1/sqrt(d_model) already folded into Wq
            s = jnp.einsum('hqd,hkd->hqk',
                           q_b.astype(jnp.bfloat16), k_b.astype(jnp.bfloat16),
                           preferred_element_type=jnp.float32)
            s = s + bias[b]                          # additive key-pad mask
            s = s - jnp.max(s, axis=-1, keepdims=True)
            e = jnp.exp(s)
            p = e * pl.reciprocal(jnp.sum(e, axis=-1, keepdims=True), approx=True)
            attn_ref[0, b] = p                       # (H, S, S) attention weights

            o = jnp.einsum('hqk,hkd->hqd',
                           p.astype(jnp.bfloat16), v_b.astype(jnp.bfloat16),
                           preferred_element_type=jnp.float32)     # (H, S, DV)
            ctx_parts.append(jnp.concatenate([o[h] for h in range(H)], axis=-1))  # (S, H*DV)
        ctx = ctx_parts[0] if Bt == 1 else jnp.concatenate(ctx_parts, axis=0)     # (N, H*DV)

        # ---- concat-head output projection: one matmul, head-sum on the MXU ----
        proj = jnp.dot(ctx.astype(jnp.bfloat16), wo_ref[0],
                       preferred_element_type=jnp.float32) + vec[0:1]
        xa = layer_norm(proj + x, vec[1:2], vec[2:3])          # residual + LN1

        # ---- position-wise feed-forward (Conv1d k=1 == (N,D)@(D,DI)) ----
        h1 = jnp.dot(xa.astype(jnp.bfloat16), w1_ref[0],
                     preferred_element_type=jnp.float32) + b1_ref[0]
        h1 = jnp.maximum(h1, 0.0)
        y = jnp.dot(h1.astype(jnp.bfloat16), w2_ref[0],
                    preferred_element_type=jnp.float32) + vec[3:4]
        xnew = layer_norm(y + xa, vec[4:5], vec[5:6])          # residual + LN2

        out_ref[0] = xnew.reshape(Bt, S, D)
        xcur[...] = xnew                                       # carry to next layer

    grid_spec = pltpu.PrefetchScalarGridSpec(
        num_scalar_prefetch=0,
        grid=(nbt, L),
        in_specs=[
            pl.BlockSpec((Bt, S, D), lambda bt, l: (bt, 0, 0)),          # embeddings
            pl.BlockSpec((Bt, 1, S), lambda bt, l: (bt, 0, 0)),          # key-pad bias
            pl.BlockSpec((1, D, 2 * QW + VW), lambda bt, l: (l, 0, 0)),  # fused Wqkv (bf16)
            pl.BlockSpec((1, VW, D), lambda bt, l: (l, 0, 0)),           # Wo (bf16)
            pl.BlockSpec((1, D, DI), lambda bt, l: (l, 0, 0)),           # W1 (bf16)
            pl.BlockSpec((1, DI, D), lambda bt, l: (l, 0, 0)),           # W2 (bf16)
            pl.BlockSpec((1, 6, D), lambda bt, l: (l, 0, 0)),            # packed vectors
            pl.BlockSpec((1, 1, DI), lambda bt, l: (l, 0, 0)),           # b1
        ],
        out_specs=[
            pl.BlockSpec((1, Bt, S, D), lambda bt, l: (l, bt, 0, 0)),        # enc_output[l]
            pl.BlockSpec((1, Bt, H, S, S), lambda bt, l: (l, bt, 0, 0, 0)),  # attn[l]
        ],
        scratch_shapes=[pltpu.VMEM((N, D), jnp.float32)],
    )

    # explicit VMEM budget: double-buffered inputs/outputs + carried-activation scratch
    f32b, bf16b = 4, 2
    est = 2 * (Bt * S * D * f32b + Bt * S * f32b
               + D * (2 * QW + VW) * bf16b + VW * D * bf16b
               + D * DI * bf16b + DI * D * bf16b
               + 6 * D * f32b + DI * f32b
               + Bt * S * D * f32b + Bt * H * S * S * f32b)
    est += N * D * f32b
    vmem_limit = int(min(max(2 * est, 16 * 2 ** 20), 48 * 2 ** 20))

    return pl.pallas_call(
        kernel,
        out_shape=(jax.ShapeDtypeStruct((L, B, S, D), jnp.float32),
                   jax.ShapeDtypeStruct((L, B, H, S, S), jnp.float32)),
        grid_spec=grid_spec,
        compiler_params=pltpu.CompilerParams(
            dimension_semantics=("parallel", "arbitrary"),
            vmem_limit_bytes=vmem_limit),
    )


# ----------------------------------------------------------------------------
# parameter init (deterministic, synthetic)
# ----------------------------------------------------------------------------
def init_params(key, n_src_vocab, n_position, n_layers, n_head, d_model, d_k, d_v, d_inner):
    keys = jax.random.split(key, 1 + n_layers)
    word_emb = jax.random.normal(keys[0], (n_src_vocab, d_model), jnp.float32)
    word_emb = word_emb.at[PAD].set(0.0)                    # padding_idx=PAD
    pos_enc = position_encoding_init(n_position, d_model)   # row 0 already zeros

    def xavier(k, shape):
        return jax.random.normal(k, shape, jnp.float32) * np.sqrt(2.0 / (shape[-2] + shape[-1]))

    layers = []
    for li in range(n_layers):
        lk = jax.random.split(keys[1 + li], 6)
        layers.append(dict(
            wq=xavier(lk[0], (n_head, d_model, d_k)),
            wk=xavier(lk[1], (n_head, d_model, d_k)),
            wv=xavier(lk[2], (n_head, d_model, d_v)),
            # Linear(H*dv, D) stored as W^T: (H*dv, D), rows head-major (concat order)
            wo=xavier(lk[3], (n_head * d_v, d_model)),
            bo=jnp.zeros((1, d_model), jnp.float32),
            g1=jnp.ones((1, d_model), jnp.float32),
            be1=jnp.zeros((1, d_model), jnp.float32),
            w1=xavier(lk[4], (d_model, d_inner)),            # Conv1d(D, Dinner, 1) as W^T
            b1=jnp.zeros((1, d_inner), jnp.float32),
            w2=xavier(lk[5], (d_inner, d_model)),            # Conv1d(Dinner, D, 1) as W^T
            b2=jnp.zeros((1, d_model), jnp.float32),
            g2=jnp.ones((1, d_model), jnp.float32),
            be2=jnp.zeros((1, d_model), jnp.float32),
        ))
    return dict(word_emb=word_emb, pos_enc=pos_enc, layers=layers)


def pack_stack_params(layers, temper, n_head, d_k, d_v):
    """Stack layers, fuse Q|K|V and Wo, fold 1/temper into Wq, cast big weights to bf16,
    and pack the small per-layer vectors into two arrays."""
    def cat(name):
        return jnp.stack([lp[name] for lp in layers], axis=0)

    def heads_to_lanes(w):           # (L, H, D, C) -> (L, D, H*C), head-major lanes
        Lc, Hc, Dc, Cc = w.shape
        return jnp.transpose(w, (0, 2, 1, 3)).reshape(Lc, Dc, Hc * Cc)

    wq = cat('wq') * (1.0 / temper)  # fold the 1/sqrt(d_model) attention scale into Wq
    wk = cat('wk')
    wv = cat('wv')
    wqkv = jnp.concatenate(
        [heads_to_lanes(wq), heads_to_lanes(wk), heads_to_lanes(wv)],
        axis=-1).astype(jnp.bfloat16)                          # (L, D, H*(2*dk+dv))
    wo = cat('wo').astype(jnp.bfloat16)                        # (L, H*dv, D)
    w1 = cat('w1').astype(jnp.bfloat16)                        # (L, D, DI)
    w2 = cat('w2').astype(jnp.bfloat16)                        # (L, DI, D)
    # packed small vectors: order [bo, g1, be1, b2, g2, be2] -> (L, 6, D)
    vecs = jnp.stack(
        [jnp.concatenate([lp['bo'], lp['g1'], lp['be1'], lp['b2'], lp['g2'], lp['be2']],
                         axis=0) for lp in layers], axis=0).astype(jnp.float32)
    b1 = cat('b1').astype(jnp.float32)                         # (L, 1, DI)
    return dict(wqkv=wqkv, wo=wo, w1=w1, w2=w2, vecs=vecs, b1=b1)


# ----------------------------------------------------------------------------
# Encoder forward (embedding/mask glue in JAX, whole layer stack in one Pallas call)
# ----------------------------------------------------------------------------
def encoder_forward(params, packed, src_seq, src_pos, stack_call, n_layers):
    x = params["word_emb"][src_seq] + params["pos_enc"][src_pos]          # (B, S, D)
    # get_attn_padding_mask -> precomputed additive bias over key positions
    key_bias = jnp.where(src_seq == PAD, NEG_BIG, 0.0).astype(jnp.float32)[:, None, :]

    enc_out_all, attn_all = stack_call(
        x, key_bias,
        packed["wqkv"], packed["wo"], packed["w1"], packed["w2"],
        packed["vecs"], packed["b1"])

    enc_outputs = [enc_out_all[l] for l in range(n_layers)]
    enc_slf_attns = [attn_all[l] for l in range(n_layers)]
    return enc_outputs, enc_slf_attns


if __name__ == "__main__":
    # small shapes consistent with the module
    B, S = 2, 8
    n_src_vocab = 50
    n_max_seq = S
    n_layers = 2
    n_head = 4
    d_model = 32
    d_inner = 64
    d_k = d_v = d_model // n_head
    temper = float(np.power(d_model, 0.5))   # ScaledDotProductAttention(d_model) temperature

    key = jax.random.PRNGKey(0)
    pkey, skey = jax.random.split(key)
    params = init_params(pkey, n_src_vocab, n_max_seq + 1, n_layers,
                         n_head, d_model, d_k, d_v, d_inner)
    packed = pack_stack_params(params["layers"], temper, n_head, d_k, d_v)

    # build a padded batch: second sequence has 3 trailing PAD tokens
    src_seq = jax.random.randint(skey, (B, S), 1, n_src_vocab)
    lengths = jnp.array([S, S - 3])
    pos_ids = jnp.arange(1, S + 1)[None, :]
    valid = pos_ids <= lengths[:, None]
    src_seq = jnp.where(valid, src_seq, PAD).astype(jnp.int32)
    src_pos = jnp.where(valid, pos_ids, PAD).astype(jnp.int32)

    nbt = 2 if B % 2 == 0 else 1             # >=2 batch tiles keeps v7x's 2 TCs busy
    stack_call = make_encoder_stack_call(B, S, d_model, n_head, d_k, d_v,
                                         d_inner, n_layers, nbt)

    enc_outputs, enc_slf_attns = encoder_forward(params, packed, src_seq, src_pos,
                                                 stack_call, n_layers)
    for t in enc_outputs + enc_slf_attns:
        jax.block_until_ready(t)

    assert enc_outputs[-1].shape == (B, S, d_model)
    assert enc_slf_attns[-1].shape == (B, n_head, S, S)
    assert all(bool(jnp.all(jnp.isfinite(t))) for t in enc_outputs)
    assert all(bool(jnp.all(jnp.isfinite(t))) for t in enc_slf_attns)
    print("KERNEL_OK")
</pallas_src>

<mosaic_0001>
module attributes {stable_mosaic.version = 11 : i64} {
  func.func @kernel(%arg0: i32, %arg1: i32, %arg2: memref<1x8x32xf32, #tpu.memory_space<vmem>>, %arg3: memref<1x1x8xf32, #tpu.memory_space<vmem>>, %arg4: memref<1x32x96xbf16, #tpu.memory_space<vmem>>, %arg5: memref<1x32x32xbf16, #tpu.memory_space<vmem>>, %arg6: memref<1x32x64xbf16, #tpu.memory_space<vmem>>, %arg7: memref<1x64x32xbf16, #tpu.memory_space<vmem>>, %arg8: memref<1x6x32xf32, #tpu.memory_space<vmem>>, %arg9: memref<1x1x64xf32, #tpu.memory_space<vmem>>, %arg10: memref<1x1x8x32xf32, #tpu.memory_space<vmem>>, %arg11: memref<1x1x4x8x8xf32, #tpu.memory_space<vmem>>, %arg12: memref<8x32xf32, #tpu.memory_space<vmem>>) attributes {dimension_semantics = [#tpu.dimension_semantics<parallel>, #tpu.dimension_semantics<arbitrary>], iteration_bounds = array<i64: 2, 2>, scalar_prefetch = 0 : i64, scratch_operands = 1 : i64, tpu.core_type = #tpu.core_type<tc>, window_params = [{transform_indices = @transform_0, window_bounds = array<i64: 1, 8, 32>}, {transform_indices = @transform_1, window_bounds = array<i64: 1, 1, 8>}, {transform_indices = @transform_2, window_bounds = array<i64: 1, 32, 96>}, {transform_indices = @transform_3, window_bounds = array<i64: 1, 32, 32>}, {transform_indices = @transform_4, window_bounds = array<i64: 1, 32, 64>}, {transform_indices = @transform_5, window_bounds = array<i64: 1, 64, 32>}, {transform_indices = @transform_6, window_bounds = array<i64: 1, 6, 32>}, {transform_indices = @transform_7, window_bounds = array<i64: 1, 1, 64>}, {transform_indices = @transform_8, window_bounds = array<i64: 1, 1, 8, 32>}, {transform_indices = @transform_9, window_bounds = array<i64: 1, 1, 4, 8, 8>}]} {
    %c0_i32 = arith.constant 0 : i32
    %0 = arith.cmpi eq, %arg1, %c0_i32 : i32
    %1 = arith.extui %0 : i1 to i32
    %c0_i32_0 = arith.constant 0 : i32
    %2 = arith.cmpi ne, %1, %c0_i32_0 : i32
    scf.if %2 {
      %c0_52 = arith.constant 0 : index
      %c0_53 = arith.constant 0 : index
      %c0_54 = arith.constant 0 : index
      %152 = vector.load %arg2[%c0_52, %c0_53, %c0_54] : memref<1x8x32xf32, #tpu.memory_space<vmem>>, vector<1x8x32xf32>
      %153 = vector.shape_cast %152 : vector<1x8x32xf32> to vector<8x32xf32>
      %c0_55 = arith.constant 0 : index
      %c0_56 = arith.constant 0 : index
      %154 = vector.load %arg12[%c0_55, %c0_56] : memref<8x32xf32, #tpu.memory_space<vmem>>, vector<8x32xf32>
      tpu.vector_store %arg12[%c0_55, %c0_56], %153 {strides = array<i32>} : memref<8x32xf32, #tpu.memory_space<vmem>>, vector<8x32xf32>,
    } else {
    }
    %c0 = arith.constant 0 : index
    %c0_1 = arith.constant 0 : index
    %3 = vector.load %arg12[%c0, %c0_1] : memref<8x32xf32, #tpu.memory_space<vmem>>, vector<8x32xf32>
    %c0_2 = arith.constant 0 : index
    %c0_3 = arith.constant 0 : index
    %c0_4 = arith.constant 0 : index
    %4 = vector.load %arg8[%c0_2, %c0_3, %c0_4] : memref<1x6x32xf32, #tpu.memory_space<vmem>>, vector<1x6x32xf32>
    %5 = vector.shape_cast %4 : vector<1x6x32xf32> to vector<6x32xf32>
    %6 = arith.truncf %3 : vector<8x32xf32> to vector<8x32xbf16>
    %c0_5 = arith.constant 0 : index
    %c0_6 = arith.constant 0 : index
    %c0_7 = arith.constant 0 : index
    %7 = vector.load %arg4[%c0_5, %c0_6, %c0_7] : memref<1x32x96xbf16, #tpu.memory_space<vmem>>, vector<1x32x96xbf16>
    %8 = vector.shape_cast %7 : vector<1x32x96xbf16> to vector<32x96xbf16>
    %cst = arith.constant dense<0.000000e+00> : vector<8x96xf32>
    %9 = tpu.matmul %6, %8, %cst {dimension_numbers = #tpu.dot_dimension_numbers<[1], [0], [0], [1], [0, 0, 1, 1], [], []>} : vector<8x32xbf16>, vector<32x96xbf16>, vector<8x96xf32> -> vector<8x96xf32>
    %10 = vector.extract_strided_slice %9 {offsets = [0, 0], sizes = [8, 32], strides = [1, 1]} : vector<8x96xf32> to vector<8x32xf32>
    %11 = vector.extract_strided_slice %9 {offsets = [0, 32], sizes = [8, 32], strides = [1, 1]} : vector<8x96xf32> to vector<8x32xf32>
    %12 = vector.extract_strided_slice %9 {offsets = [0, 64], sizes = [8, 32], strides = [1, 1]} : vector<8x96xf32> to vector<8x32xf32>
    %c0_8 = arith.constant 0 : index
    %c0_9 = arith.constant 0 : index
    %c0_10 = arith.constant 0 : index
    %13 = vector.load %arg3[%c0_8, %c0_9, %c0_10] : memref<1x1x8xf32, #tpu.memory_space<vmem>>, vector<1x1x8xf32>
    %14 = vector.extract_strided_slice %10 {offsets = [0, 0], sizes = [8, 8], strides = [1, 1]} : vector<8x32xf32> to vector<8x8xf32>
    %15 = vector.extract_strided_slice %10 {offsets = [0, 8], sizes = [8, 8], strides = [1, 1]} : vector<8x32xf32> to vector<8x8xf32>
    %16 = vector.extract_strided_slice %10 {offsets = [0, 16], sizes = [8, 8], strides = [1, 1]} : vector<8x32xf32> to vector<8x8xf32>
    %17 = vector.extract_strided_slice %10 {offsets = [0, 24], sizes = [8, 8], strides = [1, 1]} : vector<8x32xf32> to vector<8x8xf32>
    %18 = vector.shape_cast %14 : vector<8x8xf32> to vector<1x8x8xf32>
    %19 = vector.shape_cast %15 : vector<8x8xf32> to vector<1x8x8xf32>
    %20 = vector.shape_cast %16 : vector<8x8xf32> to vector<1x8x8xf32>
    %21 = vector.shape_cast %17 : vector<8x8xf32> to vector<1x8x8xf32>
    %22 = tpu.concatenate %18, %19, %20, %21 in 0 : vector<1x8x8xf32>, vector<1x8x8xf32>, vector<1x8x8xf32>, vector<1x8x8xf32> -> vector<4x8x8xf32>
    %23 = vector.extract_strided_slice %11 {offsets = [0, 0], sizes = [8, 8], strides = [1, 1]} : vector<8x32xf32> to vector<8x8xf32>
    %24 = vector.extract_strided_slice %11 {offsets = [0, 8], sizes = [8, 8], strides = [1, 1]} : vector<8x32xf32> to vector<8x8xf32>
    %25 = vector.extract_strided_slice %11 {offsets = [0, 16], sizes = [8, 8], strides = [1, 1]} : vector<8x32xf32> to vector<8x8xf32>
    %26 = vector.extract_strided_slice %11 {offsets = [0, 24], sizes = [8, 8], strides = [1, 1]} : vector<8x32xf32> to vector<8x8xf32>
    %27 = vector.shape_cast %23 : vector<8x8xf32> to vector<1x8x8xf32>
    %28 = vector.shape_cast %24 : vector<8x8xf32> to vector<1x8x8xf32>
    %29 = vector.shape_cast %25 : vector<8x8xf32> to vector<1x8x8xf32>
    %30 = vector.shape_cast %26 : vector<8x8xf32> to vector<1x8x8xf32>
    %31 = tpu.concatenate %27, %28, %29, %30 in 0 : vector<1x8x8xf32>, vector<1x8x8xf32>, vector<1x8x8xf32>, vector<1x8x8xf32> -> vector<4x8x8xf32>
    %32 = vector.extract_strided_slice %12 {offsets = [0, 0], sizes = [8, 8], strides = [1, 1]} : vector<8x32xf32> to vector<8x8xf32>
    %33 = vector.extract_strided_slice %12 {offsets = [0, 8], sizes = [8, 8], strides = [1, 1]} : vector<8x32xf32> to vector<8x8xf32>
    %34 = vector.extract_strided_slice %12 {offsets = [0, 16], sizes = [8, 8], strides = [1, 1]} : vector<8x32xf32> to vector<8x8xf32>
    %35 = vector.extract_strided_slice %12 {offsets = [0, 24], sizes = [8, 8], strides = [1, 1]} : vector<8x32xf32> to vector<8x8xf32>
    %36 = vector.shape_cast %32 : vector<8x8xf32> to vector<1x8x8xf32>
    %37 = vector.shape_cast %33 : vector<8x8xf32> to vector<1x8x8xf32>
    %38 = vector.shape_cast %34 : vector<8x8xf32> to vector<1x8x8xf32>
    %39 = vector.shape_cast %35 : vector<8x8xf32> to vector<1x8x8xf32>
    %40 = tpu.concatenate %36, %37, %38, %39 in 0 : vector<1x8x8xf32>, vector<1x8x8xf32>, vector<1x8x8xf32>, vector<1x8x8xf32> -> vector<4x8x8xf32>
    %41 = arith.truncf %22 : vector<4x8x8xf32> to vector<4x8x8xbf16>
    %42 = arith.truncf %31 : vector<4x8x8xf32> to vector<4x8x8xbf16>
    "tpu.trace_start"() <{level = 10 : i32, message = "hqd,hkd->hqk"}> : () -> ()
    %cst_11 = arith.constant dense<0.000000e+00> : vector<4x8x8xf32>
    %43 = tpu.matmul %41, %42, %cst_11 {dimension_numbers = #tpu.dot_dimension_numbers<[2], [2], [1], [1], [0, 0, 0, 1, 1, 1], [0], [0]>} : vector<4x8x8xbf16>, vector<4x8x8xbf16>, vector<4x8x8xf32> -> vector<4x8x8xf32>
    "tpu.trace_stop"() : () -> ()
    %44 = vector.shape_cast %13 : vector<1x1x8xf32> to vector<1x8xf32>
    %45 = vector.shape_cast %44 : vector<1x8xf32> to vector<1x1x8xf32>
    %46 = vector.broadcast %45 : vector<1x1x8xf32> to vector<4x8x8xf32>
    %47 = arith.addf %43, %46 : vector<4x8x8xf32>
    %cst_12 = arith.constant dense<0xFF800000> : vector<4x8xf32>
    %48 = vector.multi_reduction <maximumf>, %47, %cst_12 [2] : vector<4x8x8xf32> to vector<4x8xf32>
    %49 = vector.shape_cast %48 : vector<4x8xf32> to vector<4x8x1xf32>
    %50 = vector.broadcast %49 : vector<4x8x1xf32> to vector<4x8x8xf32>
    %51 = arith.subf %47, %50 : vector<4x8x8xf32>
    %52 = math.exp %51 : vector<4x8x8xf32>
    %cst_13 = arith.constant dense<0.000000e+00> : vector<4x8xf32>
    %53 = vector.multi_reduction <add>, %52, %cst_13 [2] : vector<4x8x8xf32> to vector<4x8xf32>
    %54 = vector.shape_cast %53 : vector<4x8xf32> to vector<4x8x1xf32>
    %55 = tpu.reciprocal %54 {approx = true} : vector<4x8x1xf32> -> vector<4x8x1xf32>
    %56 = vector.broadcast %55 : vector<4x8x1xf32> to vector<4x8x8xf32>
    %57 = arith.mulf %52, %56 : vector<4x8x8xf32>
    %c0_14 = arith.constant 0 : index
    %c0_15 = arith.constant 0 : index
    %c0_16 = arith.constant 0 : index
    %c0_17 = arith.constant 0 : index
    %c0_18 = arith.constant 0 : index
    %58 = vector.load %arg11[%c0_14, %c0_15, %c0_16, %c0_17, %c0_18] : memref<1x1x4x8x8xf32, #tpu.memory_space<vmem>>, vector<1x1x4x8x8xf32>
    %59 = vector.shape_cast %58 : vector<1x1x4x8x8xf32> to vector<4x8x8xf32>
    %60 = vector.shape_cast %57 : vector<4x8x8xf32> to vector<1x1x4x8x8xf32>
    tpu.vector_store %arg11[%c0_14, %c0_15, %c0_16, %c0_17, %c0_18], %60 {strides = array<i32>} : memref<1x1x4x8x8xf32, #tpu.memory_space<vmem>>, vector<1x1x4x8x8xf32>,
    %61 = arith.truncf %57 : vector<4x8x8xf32> to vector<4x8x8xbf16>
    %62 = arith.truncf %40 : vector<4x8x8xf32> to vector<4x8x8xbf16>
    "tpu.trace_start"() <{level = 10 : i32, message = "hqk,hkd->hqd"}> : () -> ()
    %cst_19 = arith.constant dense<0.000000e+00> : vector<4x8x8xf32>
    %63 = tpu.matmul %61, %62, %cst_19 {dimension_numbers = #tpu.dot_dimension_numbers<[2], [1], [1], [2], [0, 0, 0, 1, 1, 2], [0], [0]>} : vector<4x8x8xbf16>, vector<4x8x8xbf16>, vector<4x8x8xf32> -> vector<4x8x8xf32>
    "tpu.trace_stop"() : () -> ()
    %64 = vector.extract_strided_slice %63 {offsets = [0, 0, 0], sizes = [1, 8, 8], strides = [1, 1, 1]} : vector<4x8x8xf32> to vector<1x8x8xf32>
    %65 = vector.shape_cast %64 : vector<1x8x8xf32> to vector<8x8xf32>
    %66 = vector.extract_strided_slice %63 {offsets = [1, 0, 0], sizes = [1, 8, 8], strides = [1, 1, 1]} : vector<4x8x8xf32> to vector<1x8x8xf32>
    %67 = vector.shape_cast %66 : vector<1x8x8xf32> to vector<8x8xf32>
    %68 = vector.extract_strided_slice %63 {offsets = [2, 0, 0], sizes = [1, 8, 8], strides = [1, 1, 1]} : vector<4x8x8xf32> to vector<1x8x8xf32>
    %69 = vector.shape_cast %68 : vector<1x8x8xf32> to vector<8x8xf32>
    %70 = vector.extract_strided_slice %63 {offsets = [3, 0, 0], sizes = [1, 8, 8], strides = [1, 1, 1]} : vector<4x8x8xf32> to vector<1x8x8xf32>
    %71 = vector.shape_cast %70 : vector<1x8x8xf32> to vector<8x8xf32>
    %72 = tpu.concatenate %65, %67, %69, %71 in 1 : vector<8x8xf32>, vector<8x8xf32>, vector<8x8xf32>, vector<8x8xf32> -> vector<8x32xf32>
    %73 = arith.truncf %72 : vector<8x32xf32> to vector<8x32xbf16>
    %c0_20 = arith.constant 0 : index
    %c0_21 = arith.constant 0 : index
    %c0_22 = arith.constant 0 : index
    %74 = vector.load %arg5[%c0_20, %c0_21, %c0_22] : memref<1x32x32xbf16, #tpu.memory_space<vmem>>, vector<1x32x32xbf16>
    %75 = vector.shape_cast %74 : vector<1x32x32xbf16> to vector<32x32xbf16>
    %cst_23 = arith.constant dense<0.000000e+00> : vector<8x32xf32>
    %76 = tpu.matmul %73, %75, %cst_23 {dimension_numbers = #tpu.dot_dimension_numbers<[1], [0], [0], [1], [0, 0, 1, 1], [], []>} : vector<8x32xbf16>, vector<32x32xbf16>, vector<8x32xf32> -> vector<8x32xf32>
    %77 = vector.extract_strided_slice %5 {offsets = [0, 0], sizes = [1, 32], strides = [1, 1]} : vector<6x32xf32> to vector<1x32xf32>
    %78 = vector.broadcast %77 : vector<1x32xf32> to vector<8x32xf32>
    %79 = arith.addf %76, %78 : vector<8x32xf32>
    %80 = arith.addf %79, %3 : vector<8x32xf32>
    %81 = vector.extract_strided_slice %5 {offsets = [1, 0], sizes = [1, 32], strides = [1, 1]} : vector<6x32xf32> to vector<1x32xf32>
    %82 = vector.extract_strided_slice %5 {offsets = [2, 0], sizes = [1, 32], strides = [1, 1]} : vector<6x32xf32> to vector<1x32xf32>
    %cst_24 = arith.constant dense<0.000000e+00> : vector<8xf32>
    %83 = vector.multi_reduction <add>, %80, %cst_24 [1] : vector<8x32xf32> to vector<8xf32>
    %84 = vector.shape_cast %83 : vector<8xf32> to vector<8x1xf32>
    %cst_25 = arith.constant 3.200000e+01 : f32
    %85 = vector.broadcast %cst_25 : f32 to vector<8x1xf32>
    %86 = arith.divf %84, %85 : vector<8x1xf32>
    %87 = vector.broadcast %86 : vector<8x1xf32> to vector<8x32xf32>
    %88 = arith.subf %80, %87 : vector<8x32xf32>
    %89 = arith.mulf %88, %88 : vector<8x32xf32>
    %cst_26 = arith.constant dense<0.000000e+00> : vector<8xf32>
    %90 = vector.multi_reduction <add>, %89, %cst_26 [1] : vector<8x32xf32> to vector<8xf32>
    %91 = vector.shape_cast %90 : vector<8xf32> to vector<8x1xf32>
    %cst_27 = arith.constant 0.0322580636 : f32
    %92 = vector.broadcast %cst_27 : f32 to vector<8x1xf32>
    %93 = arith.mulf %91, %92 : vector<8x1xf32>
    %94 = vector.broadcast %86 : vector<8x1xf32> to vector<8x32xf32>
    %95 = arith.subf %80, %94 : vector<8x32xf32>
    %96 = math.sqrt %93 : vector<8x1xf32>
    %cst_28 = arith.constant 1.000000e-03 : f32
    %97 = vector.broadcast %cst_28 : f32 to vector<8x1xf32>
    %98 = arith.addf %96, %97 : vector<8x1xf32>
    %99 = vector.broadcast %98 : vector<8x1xf32> to vector<8x32xf32>
    %100 = arith.divf %95, %99 : vector<8x32xf32>
    %101 = vector.broadcast %81 : vector<1x32xf32> to vector<8x32xf32>
    %102 = arith.mulf %100, %101 : vector<8x32xf32>
    %103 = vector.broadcast %82 : vector<1x32xf32> to vector<8x32xf32>
    %104 = arith.addf %102, %103 : vector<8x32xf32>
    %105 = arith.truncf %104 : vector<8x32xf32> to vector<8x32xbf16>
    %c0_29 = arith.constant 0 : index
    %c0_30 = arith.constant 0 : index
    %c0_31 = arith.constant 0 : index
    %106 = vector.load %arg6[%c0_29, %c0_30, %c0_31] : memref<1x32x64xbf16, #tpu.memory_space<vmem>>, vector<1x32x64xbf16>
    %107 = vector.shape_cast %106 : vector<1x32x64xbf16> to vector<32x64xbf16>
    %cst_32 = arith.constant dense<0.000000e+00> : vector<8x64xf32>
    %108 = tpu.matmul %105, %107, %cst_32 {dimension_numbers = #tpu.dot_dimension_numbers<[1], [0], [0], [1], [0, 0, 1, 1], [], []>} : vector<8x32xbf16>, vector<32x64xbf16>, vector<8x64xf32> -> vector<8x64xf32>
    %c0_33 = arith.constant 0 : index
    %c0_34 = arith.constant 0 : index
    %c0_35 = arith.constant 0 : index
    %109 = vector.load %arg9[%c0_33, %c0_34, %c0_35] : memref<1x1x64xf32, #tpu.memory_space<vmem>>, vector<1x1x64xf32>
    %110 = vector.shape_cast %109 : vector<1x1x64xf32> to vector<1x64xf32>
    %111 = vector.broadcast %110 : vector<1x64xf32> to vector<8x64xf32>
    %112 = arith.addf %108, %111 : vector<8x64xf32>
    %cst_36 = arith.constant 0.000000e+00 : f32
    %113 = vector.broadcast %cst_36 : f32 to vector<8x64xf32>
    %114 = arith.maximumf %112, %113 : vector<8x64xf32>
    %115 = arith.truncf %114 : vector<8x64xf32> to vector<8x64xbf16>
    %c0_37 = arith.constant 0 : index
    %c0_38 = arith.constant 0 : index
    %c0_39 = arith.constant 0 : index
    %116 = vector.load %arg7[%c0_37, %c0_38, %c0_39] : memref<1x64x32xbf16, #tpu.memory_space<vmem>>, vector<1x64x32xbf16>
    %117 = vector.shape_cast %116 : vector<1x64x32xbf16> to vector<64x32xbf16>
    %cst_40 = arith.constant dense<0.000000e+00> : vector<8x32xf32>
    %118 = tpu.matmul %115, %117, %cst_40 {dimension_numbers = #tpu.dot_dimension_numbers<[1], [0], [0], [1], [0, 0, 1, 1], [], []>} : vector<8x64xbf16>, vector<64x32xbf16>, vector<8x32xf32> -> vector<8x32xf32>
    %119 = vector.extract_strided_slice %5 {offsets = [3, 0], sizes = [1, 32], strides = [1, 1]} : vector<6x32xf32> to vector<1x32xf32>
    %120 = vector.broadcast %119 : vector<1x32xf32> to vector<8x32xf32>
    %121 = arith.addf %118, %120 : vector<8x32xf32>
    %122 = arith.addf %121, %104 : vector<8x32xf32>
    %123 = vector.extract_strided_slice %5 {offsets = [4, 0], sizes = [1, 32], strides = [1, 1]} : vector<6x32xf32> to vector<1x32xf32>
    %124 = vector.extract_strided_slice %5 {offsets = [5, 0], sizes = [1, 32], strides = [1, 1]} : vector<6x32xf32> to vector<1x32xf32>
    %cst_41 = arith.constant dense<0.000000e+00> : vector<8xf32>
    %125 = vector.multi_reduction <add>, %122, %cst_41 [1] : vector<8x32xf32> to vector<8xf32>
    %126 = vector.shape_cast %125 : vector<8xf32> to vector<8x1xf32>
    %cst_42 = arith.constant 3.200000e+01 : f32
    %127 = vector.broadcast %cst_42 : f32 to vector<8x1xf32>
    %128 = arith.divf %126, %127 : vector<8x1xf32>
    %129 = vector.broadcast %128 : vector<8x1xf32> to vector<8x32xf32>
    %130 = arith.subf %122, %129 : vector<8x32xf32>
    %131 = arith.mulf %130, %130 : vector<8x32xf32>
    %cst_43 = arith.constant dense<0.000000e+00> : vector<8xf32>
    %132 = vector.multi_reduction <add>, %131, %cst_43 [1] : vector<8x32xf32> to vector<8xf32>
    %133 = vector.shape_cast %132 : vector<8xf32> to vector<8x1xf32>
    %cst_44 = arith.constant 0.0322580636 : f32
    %134 = vector.broadcast %cst_44 : f32 to vector<8x1xf32>
    %135 = arith.mulf %133, %134 : vector<8x1xf32>
    %136 = vector.broadcast %128 : vector<8x1xf32> to vector<8x32xf32>
    %137 = arith.subf %122, %136 : vector<8x32xf32>
    %138 = math.sqrt %135 : vector<8x1xf32>
    %cst_45 = arith.constant 1.000000e-03 : f32
    %139 = vector.broadcast %cst_45 : f32 to vector<8x1xf32>
    %140 = arith.addf %138, %139 : vector<8x1xf32>
    %141 = vector.broadcast %140 : vector<8x1xf32> to vector<8x32xf32>
    %142 = arith.divf %137, %141 : vector<8x32xf32>
    %143 = vector.broadcast %123 : vector<1x32xf32> to vector<8x32xf32>
    %144 = arith.mulf %142, %143 : vector<8x32xf32>
    %145 = vector.broadcast %124 : vector<1x32xf32> to vector<8x32xf32>
    %146 = arith.addf %144, %145 : vector<8x32xf32>
    %147 = vector.shape_cast %146 : vector<8x32xf32> to vector<1x8x32xf32>
    %c0_46 = arith.constant 0 : index
    %c0_47 = arith.constant 0 : index
    %c0_48 = arith.constant 0 : index
    %c0_49 = arith.constant 0 : index
    %148 = vector.load %arg10[%c0_46, %c0_47, %c0_48, %c0_49] : memref<1x1x8x32xf32, #tpu.memory_space<vmem>>, vector<1x1x8x32xf32>
    %149 = vector.shape_cast %148 : vector<1x1x8x32xf32> to vector<1x8x32xf32>
    %150 = vector.shape_cast %147 : vector<1x8x32xf32> to vector<1x1x8x32xf32>
    tpu.vector_store %arg10[%c0_46, %c0_47, %c0_48, %c0_49], %150 {strides = array<i32>} : memref<1x1x8x32xf32, #tpu.memory_space<vmem>>, vector<1x1x8x32xf32>,
    %c0_50 = arith.constant 0 : index
    %c0_51 = arith.constant 0 : index
    %151 = vector.load %arg12[%c0_50, %c0_51] : memref<8x32xf32, #tpu.memory_space<vmem>>, vector<8x32xf32>
    tpu.vector_store %arg12[%c0_50, %c0_51], %146 {strides = array<i32>} : memref<8x32xf32, #tpu.memory_space<vmem>>, vector<8x32xf32>,
    return
  }
  func.func @transform_0(%arg0: i32, %arg1: i32) -> (i32, i32, i32) {
    %c0_i32 = arith.constant 0 : i32
    %c0_i32_0 = arith.constant 0 : i32
    %c0_i32_1 = arith.constant 0 : i32
    return %arg0, %c0_i32, %c0_i32_0 : i32, i32, i32
  }
  func.func @transform_1(%arg0: i32, %arg1: i32) -> (i32, i32, i32) {
    %c0_i32 = arith.constant 0 : i32
    %c0_i32_0 = arith.constant 0 : i32
    %c0_i32_1 = arith.constant 0 : i32
    return %arg0, %c0_i32, %c0_i32_0 : i32, i32, i32
  }
  func.func @transform_2(%arg0: i32, %arg1: i32) -> (i32, i32, i32) {
    %c0_i32 = arith.constant 0 : i32
    %c0_i32_0 = arith.constant 0 : i32
    %c0_i32_1 = arith.constant 0 : i32
    return %arg1, %c0_i32, %c0_i32_0 : i32, i32, i32
  }
  func.func @transform_3(%arg0: i32, %arg1: i32) -> (i32, i32, i32) {
    %c0_i32 = arith.constant 0 : i32
    %c0_i32_0 = arith.constant 0 : i32
    %c0_i32_1 = arith.constant 0 : i32
    return %arg1, %c0_i32, %c0_i32_0 : i32, i32, i32
  }
  func.func @transform_4(%arg0: i32, %arg1: i32) -> (i32, i32, i32) {
    %c0_i32 = arith.constant 0 : i32
    %c0_i32_0 = arith.constant 0 : i32
    %c0_i32_1 = arith.constant 0 : i32
    return %arg1, %c0_i32, %c0_i32_0 : i32, i32, i32
  }
  func.func @transform_5(%arg0: i32, %arg1: i32) -> (i32, i32, i32) {
    %c0_i32 = arith.constant 0 : i32
    %c0_i32_0 = arith.constant 0 : i32
    %c0_i32_1 = arith.constant 0 : i32
    return %arg1, %c0_i32, %c0_i32_0 : i32, i32, i32
  }
  func.func @transform_6(%arg0: i32, %arg1: i32) -> (i32, i32, i32) {
    %c0_i32 = arith.constant 0 : i32
    %c0_i32_0 = arith.constant 0 : i32
    %c0_i32_1 = arith.constant 0 : i32
    return %arg1, %c0_i32, %c0_i32_0 : i32, i32, i32
  }
  func.func @transform_7(%arg0: i32, %arg1: i32) -> (i32, i32, i32) {
    %c0_i32 = arith.constant 0 : i32
    %c0_i32_0 = arith.constant 0 : i32
    %c0_i32_1 = arith.constant 0 : i32
    return %arg1, %c0_i32, %c0_i32_0 : i32, i32, i32
  }
  func.func @transform_8(%arg0: i32, %arg1: i32) -> (i32, i32, i32, i32) {
    %c0_i32 = arith.constant 0 : i32
    %c0_i32_0 = arith.constant 0 : i32
    %c0_i32_1 = arith.constant 0 : i32
    return %arg1, %arg0, %c0_i32, %c0_i32_0 : i32, i32, i32, i32
  }
  func.func @transform_9(%arg0: i32, %arg1: i32) -> (i32, i32, i32, i32, i32) {
    %c0_i32 = arith.constant 0 : i32
    %c0_i32_0 = arith.constant 0 : i32
    %c0_i32_1 = arith.constant 0 : i32
    %c0_i32_2 = arith.constant 0 : i32
    return %arg1, %arg0, %c0_i32, %c0_i32_0, %c0_i32_1 : i32, i32, i32, i32, i32
  }
}

</mosaic_0001>

<bundles_post_ra>
// kernel: tpu_custom_call.1
= control target key start
LH: loop header
LB: loop body
LE: loop exit
PB: predicated region body
PF: predicated region fallthrough
CT: control target
= control target key end

     0   :  { %s2549_s0 = inlined_call_operand.hbm [shape: f32[2,8,32], index: 0, kind: input, shape index: {}]   ;;  %s2550_s1 = inlined_call_operand.vmem [shape: f32[2,1,8], index: 1, kind: input, shape index: {}]   ;;  %s2551_s2 = inlined_call_operand.vmem [shape: bf16[2,32,96], index: 2, kind: input, shape index: {}]   ;;  %s2552_s3 = inlined_call_operand.vmem [shape: bf16[2,32,32], index: 3, kind: input, shape index: {}]   ;;  %s2553_s4 = inlined_call_operand.vmem [shape: bf16[2,32,64], index: 4, kind: input, shape index: {}]   ;;  %s2554_s5 = inlined_call_operand.vmem [shape: bf16[2,64,32], index: 5, kind: input, shape index: {}]   ;;  %s2555_s6 = inlined_call_operand.vmem [shape: f32[2,6,32], index: 6, kind: input, shape index: {}]   ;;  %s2556_s7 = inlined_call_operand.vmem [shape: f32[2,1,64], index: 7, kind: input, shape index: {}]   ;;  %s2557_s8 = inlined_call_operand.hbm [shape: f32[2,2,8,32], index: 8, kind: output, shape index: {0}]   ;;  %s2558_s9 = inlined_call_operand.hbm [shape: f32[2,2,4,8,8], index: 9, kind: output, shape index: {1}]  }
   0x1   :  { %2575 = sst [smem:[#allocation26_spill]] %s2549_s0 }
   0x2   :  { %2576 = sst [smem:[#allocation27_spill]] %s2551_s2 }
   0x3   :  { %2577 = sst [smem:[#allocation28_spill]] %s2552_s3 }
   0x4   :  { %2578 = sst [smem:[#allocation29_spill]] %s2555_s6 }
   0x5   :  { %2579 = sst [smem:[#allocation30_spill]] %s2556_s7 }
   0x6   :  { %2580 = sst [smem:[#allocation31_spill]] %s2557_s8 }
   0x7   :  { %2581 = sst [smem:[#allocation32_spill]] %s2558_s9 }
   0x8   :  { %15 = vsyncpa [#allocation4], 0 }
   0x9   :  { %17 = vsyncpa [#allocation4 + $0x1], 0 }
   0xa   :  { %18 = vsyncpa [#allocation5], 0 }
   0xb   :  { %20 = vsyncpa [#allocation5 + $0x1], 0 }
   0xc   :  { %21 = vsyncpa [#allocation8], 0 }
   0xd   :  { %23 = vsyncpa [#allocation8 + $0x1], 0  ;;  %s2131_s30 = smov 0   ;;  %s2133_s10 = smov 0  }
   0xe   :  { %s2135_s11 = smov 0   ;;  %s2137_s12 = smov 0  }
   0xf   :  { %s2139_s13 = smov 0   ;;  %s2141_s14 = smov 0  }
  0x10   :  { %s2143_s15 = smov 0   ;;  %s2145_s16 = smov 0  }
  0x11   :  { %s2147_s17 = smov 0   ;;  %s2149_s18 = smov 0  }
  0x12   :  { %s2151_s19 = smov 0  }
  0x13 LB: > { %2582 = sst [smem:[#allocation12_spill]] %s2025_s30  ;;  %s1564_s20 = sadd.s32 4294967295, %s2065_s19   ;;  %s2065_s19 = sphi %s2151_s19, %s29_s19   ;;  %s2061_s18 = sphi %s2149_s18, %s2625_s18   ;;  %s2057_s17 = sphi %s2147_s17, %s2624_s17   ;;  %s2053_s16 = sphi %s2145_s16, %s2623_s16   ;;  %s2049_s15 = sphi %s2143_s15, %s2622_s15   ;;  %s2045_s14 = sphi %s2141_s14, %s2621_s14   ;;  %s2041_s13 = sphi %s2139_s13, %s2620_s13   ;;  %s2037_s12 = sphi %s2137_s12, %s2619_s12   ;;  %s2033_s11 = sphi %s2135_s11, %s2618_s11   ;;  %s2029_s10 = sphi %s2133_s10, %s2617_s10   ;;  %s2025_s30 = sphi %s2131_s30, %s2616_s30  }
  0x14   : > { %2583 = sst [smem:[#allocation13_spill]] %s2029_s10  ;;  %s1565_s21 = sadd.s32 4294967294, %s2065_s19  }
  0x15   : > { %2584 = sst [smem:[#allocation14_spill]] %s2033_s11  ;;  %s38_s22 = sadd.s32 1, %s2057_s17 }
  0x16   : > { %2585 = sst [smem:[#allocation15_spill]] %s2041_s13  ;;  %s41_s23 = sadd.s32 1, %s2061_s18 }
  0x17   : > { %2586 = sst [smem:[#allocation16_spill]] %s2045_s14  ;;  %p39_p0 = scmp.ge.s32.totalorder %s38_s22, 2 }
  0x18   : > { %2587 = sst [smem:[#allocation17_spill]] %s2057_s17  ;;  %s48_s24 = sadd.s32 1, %s2045_s14 }
  0x19   : > { %2588 = sst [smem:[#allocation18_spill]] %s2061_s18  ;;  %p55_p1 = scmp.ne.s32.totalorder %s2045_s14, %s2041_s13 }
  0x1a   : > { %2589 = sst [smem:[#allocation19_spill]] %s2065_s19  ;;  %p56_p2 = scmp.eq.s32.totalorder %s2065_s19, 0 }
  0x1b   : > { %s2627_s22 = smov (%p39_p0, %s38_s22), 0  ;;  %s2629_s23 = smov (!%p39_p0, %s41_s23), %s2061_s18 }
  0x1c   : > { %2590 = sst [smem:[#allocation20_spill]] %s2627_s22  ;;  %p2195_p3 = por %p56_p2, %p55_p1 }
  0x1d   : > { %p61_p4 = scmp.ne.s32.totalorder %s2041_s13, %s2037_s12  ;;  %p43_p5 = scmp.ge.s32.totalorder %s2629_s23, 2 }
  0x1e   : > { %p62_p6 = scmp.eq.s32.totalorder %s1564_s20, 0  ;;  %s253_s26 = ssub.s32 %s2057_s17, %s2627_s22 }
  0x1f   : > { %s258_s27 = sadd.s32 1, %s2033_s11  ;;  %s2631_s23 = smov (%p43_p5, %s2629_s23), 0 }
  0x20   : > { %2592 = sst [smem:[#allocation21_spill]] %s2631_s23  ;;  %p2205_p7 = por %p62_p6, %p61_p4 }
  0x21   : > { %p268_p8 = scmp.ne.s32.totalorder %s2033_s11, %s2029_s10  ;;  %s45_s29 = ssub.s32 %s2061_s18, %s2631_s23 }
  0x22   : > { %p269_p9 = scmp.eq.s32.totalorder %s1564_s20, 3  ;;  %p46_p10 = scmp.eq.s32.totalorder %s45_s29, 0 }
  0x23   : > { %s255_s12 = sor.u32 %s253_s26, %s45_s29  ;;  %p274_p13 = scmp.ne.s32.totalorder %s2029_s10, %s2025_s30 }
  0x24   : > { %p256_p11 = scmp.eq.s32.totalorder %s255_s12, 0  ;;  %p2213_p12 = por %p269_p9, %p268_p8 }
  0x25   : > { %s2218_s17 = scalar_select %p46_p10, %s2045_s14, %s48_s24  }
  0x26   : > { %s2594_s22 = scalar_select %p2213_p12, 1, 0 }
  0x27   : > { %2596 = sst [smem:[#allocation23_spill]] %s2218_s17  ;;  %p275_p0 = scmp.eq.s32.totalorder %s1565_s21, 3 }
  0x28   : > { %2595 = sst [smem:[#allocation22_spill]] %s2594_s22  ;;  %p1752_p1 = scmp.lt.s32.totalorder %s2065_s19, 4 }
  0x29   : > { %s2221_s8 = scalar_select %p256_p11, %s2033_s11, %s258_s27  }
  0x2a   : > { %p2226_p2 = por %p275_p0, %p274_p13  ;;  %s323_s20 = sand.u32 1, %s2045_s14  }
  0x2b   : > { %2597 = sst [smem:[#allocation24_spill]] %s2221_s8  ;;  %s1568_s26 = sshll.u32 %s323_s20, 3 }
  0x2c   : > { %s2598_s23 = scalar_select %p2226_p2, 1, 0 }
  0x2d   : > { %s1569_s29 = sshll.u32 %s2061_s18, 7  ;;  %s2600_s0 = sld [smem:[#allocation26_spill]] }
  0x2e   : > { %2599 = sst [smem:[#allocation25_spill]] %s2598_s23  ;;  %s327_s22 = scalar_lea.vmem [#allocation3], %s1568_s26 }
  0x2f   : > { %s334_s7 = sshll.u32 %s327_s22, 4  ;;  %p2237_p4 = pnand %p1752_p1, %p2195_p3  ;;  %s335_s7 = int_to_ptr.vmem [resolvable:$true] %s334_s7 }
  0x30   : > { %p1570_p5 = scmp.ge.s32.totalorder %s2065_s19, 1  ;;  %p390_p6 = scmp.lt.s32.totalorder %s2065_s19, 5 }
  0x31   : > { %s324_s21 = scalar_lea.sflag [#allocation4], %s323_s20  ;;  %p1889_p8 = pneg %p2237_p4 }
  0x32   : > { %s1900_s27 = scalar_lea.vmem %s335_s7, 128  ;;  %s2067_s9 = smov [#allocation3]  }
  0x33   : > { %s332_s6 = scalar_lea.hbm %s2600_s0, %s1569_s29  ;;  %p1901_p9 = scmp.ne.s32.totalorder %s335_s7, %s1900_s27 }
  0x34   : > { %s1905_s29 = sshll.u32 %s2067_s9, 4  ;;  %s1906_s29 = int_to_ptr.vmem [resolvable:$false] %s1905_s29 }
  0x35   : > { %p1903_p10 = pnand %p1901_p9, %p1889_p8  ;;  %s1907_s22 = scalar_lea.vmem %s1906_s29, 256 }
  0x36   : > { %p1908_p13 = scmp.lt.s32.totalorder %s335_s7, %s1906_s29  ;;  %p1909_p0 = scmp.lt.s32.totalorder %s1907_s22, %s1900_s27 }
  0x37   : > { %p1904_p11 = pneg %p1903_p10 }
  0x38   : > { %p1910_p3 = por %p1909_p0, %p1908_p13 }
  0x3a   : > { %p1911_p1 = pnand %p1910_p3, %p1904_p11 }
  0x3c   : > { %1914 = shalt.err (!%p1911_p1)
}
  0x3d   : > { %1744 = dma.hbm_to_vmem [thread:$0]  (!%p2237_p4), %s332_s6, 128, %s335_s7, %s324_s21  }
  0x3e   : > { %p391_p2 = pnand %p1570_p5, %p390_p6 }
  0x3f   : > { %s396_s25 = sand.u32 (!%p391_p2), 1, %s2041_s13  }
  0x40   : > { %394 = sbr.rel (%p391_p2) target bundleno = 2619 (0xa3b), region = 52  ;;  %s1571_s20 = sshll.u32 (!%p391_p2), %s396_s25, 3 }
  0x41   : > { %s397_s26 = scalar_lea.sflag (!%p391_p2), [#allocation4], %s396_s25  ;;  %s400_s12 = scalar_lea.vmem (!%p391_p2), [#allocation3], %s1571_s20 }
  0x45   : > { %2012 = dma.done.wait (%p2205_p7), %s397_s26, 128  }
  0x46   : > { %2014 = vsyncadd (%p2205_p7), %s397_s26, 4294967168  ;;  %s2257_s6 = sand.u32 1, %s2029_s10   ;;  %p470_p2 = scmp.lt.s32.totalorder %s2053_s16, 1 }
  0x47   : > { %s1572_s7 = sshll.u32 %s2257_s6, 3  ;;  %s1573_s24 = sshll.u32 %s2257_s6, 5 }
  0x48   : > { %s2263_s21 = scalar_select %p470_p2, %s2053_s16, 1 }
  0x49   : > { %p473_p4 = scmp.lt.s32.totalorder %s2049_s15, 1  ;;  %s2602_s2 = sld [smem:[#allocation27_spill]] }
  0x4a   : > { %s2603_s3 = sld [smem:[#allocation28_spill]]  ;;  %s2305_s13 = scalar_lea.vmem [#allocation7], %s1573_s24 }
  0x4b   : > { %s2271_s29 = scalar_select %p473_p4, %s2049_s15, 1 }
  0x4c   : > { %s2604_s20 = sld [smem:[#allocation30_spill]]  ;;  %p1583_p7 = scmp.ne.s32.totalorder %s2049_s15, 0 }
  0x4d   : > { %s1617_s22 = sshll.u32 %s2271_s29, 4  ;;  %s1620_s25 = sshll.u32 %s2271_s29, 5 }
  0x4e   : > { %s2286_s9 = scalar_lea.vmem %s2553_s4, %s1617_s22  ;;  %s2291_s11 = scalar_lea.vmem %s2554_s5, %s1620_s25 }
  0x4f   : > { %s477_s0 = scalar_lea.vmem %s2602_s2, %s1617_s22  ;;  %s1582_s10 = sshll.u32 %s2271_s29, 3 }
  0x50   : > { %s2281_s14 = scalar_lea.vmem %s2603_s3, %s1617_s22  ;;  %s2605_s17 = sld [smem:[#allocation29_spill]] }
  0x51   : > { %s2303_s3 = scalar_lea.vmem [#allocation6], %s1572_s7 }
  0x52   : > { %s499_s26 = scalar_lea.vmem %s2604_s20, %s2271_s29  ;;  %504 = sbr.rel (%p1583_p7) target bundleno = 89 (0x59), region = 60 }
  0x56   : > { %s2301_s18 = scalar_lea.vmem %s2605_s17, %s1582_s10 }
  0x57   : > { %v505_v0 = vld [vmem:[%s400_s12] sm:$0xff]  ;;  %vm506_vm0 = vcmask 261120  }
  0x58   : > { %507 = vst.msk [vmem:[#allocation2] sm:$0xff] %vm506_vm0, %v505_v0 }
  0x59 PF: > { %v1853_v1 = vld [vmem:[%s477_s0 + $0x8] sm:$0xff]   ;;  %v2068_v2 = vmov 0.0   ;;  %v1854_v3 = vld [vmem:[%s477_s0] sm:$0xff]   ;;  %vm2069_vm1 = vmmov 0   ;;  %vm527_vm2 = vcmask 261120   ;;  %s2070_s0 = smov 104   ;;  %s2606_s23 = scalar_lea.vmem %s2550_s1, %s2263_s21 }
  0x5a   : > { %1651 = vmatprep.subr.bf16.mxu0 %v2068_v2  ;;  %1659 = vmatprep.subr.bf16.mxu1 %v2068_v2  ;;  %s2071_s2 = smov 120   ;;  %s2072_s8 = smov 112   ;;  %vm595_vm3 = vcmask 64512   ;;  %v1587_v25 = vld [vmem:[%s2606_s23] ss:$0 sm:$0xff]  ;;  %vm846_vm4 = vcmask 1043456  }
  0x5b   : > { %1652 = vmatpush3.bf16.msra.mxu0 %v1853_v1  ;;  %1655 = vmatprep.mubr.msk.bf16.mxu0 %vm2069_vm1, %v2068_v2  ;;  %s2073_s30 = smov 96   ;;  %s2074_s12 = smov 64   ;;  %vm1047_vm5 = vcmask 130048   ;;  %vm1049_vm6 = vcmask 195584   ;;  %vm1252_vm9 = vcmask 523264  }
  0x5c   : > { %1653 = vmatprep.subr.bf16.mxu0 %v2068_v2  ;;  %1661 = vmatprep.mubr.msk.bf16.mxu1 %vm2069_vm1, %v2068_v2  ;;  %s2075_s7 = smov 8   ;;  %s2076_s24 = smov 16  }
  0x5d   : > { %s2077_s21 = smov 24   ;;  %s1612_s29 = sshll.u32 %s2053_s16, 2 }
  0x5e   : > { %s1613_s25 = sshll.u32 %s2049_s15, 3  ;;  %s2078_s10 = smov [#allocation7]  }
  0x5f   : > { %v2312_v4 = vld [vmem:[#allocation2] sm:$0xff]  ;;  %1654 = vmatpush3.bf16.msra.mxu0 %v1854_v3  ;;  %s1362_s27 = sadd.s32 %s1613_s25, %s1612_s29  ;;  %s1919_s19 = sshll.u32 %s2078_s10, 4  ;;  %s1920_s19 = int_to_ptr.vmem [resolvable:$false] %s1919_s19 }
  0x60   : > { %v510_v5 = vpack.c.bf16 %v2312_v4, %v2312_v4  ;;  %1665 = vmatprep.subr.bf16.mxu0 %v2068_v2  ;;  %s1614_s20 = sshll.u32 %s1362_s27, 7 }
  0x62   : > { %1656 = vmatmul.mubr.msk.bf16.vlgmr.msra.gmra.mxu0 %vm527_vm2, %v510_v5 }
  0x63   : > { %1667 = vmatprep.mubr.msk.bf16.mxu0 %vm2069_vm1, %v2068_v2 }
 0x122   : > { %v565_v6 = vpop.f32.mrf.mxu0 }
 0x123   : > { %579 = vrot.lane.b32.xlu1 %v565_v6, %s2070_s0  ;;  %573 = vrot.lane.b32.xlu0 %v565_v6, %s2071_s2  ;;  %v2323_v8 = vpack.c.bf16 %v565_v6, %v565_v6 }
 0x124   : > { %v1657_v7 = vpop.f32.mrf.mxu0 }
 0x126   : > { %v568_v9 = vpop.f32.mrf.mxu0 }
 0x127   : > { %576 = vrot.lane.b32.xlu0 %v565_v6, %s2072_s8  ;;  %593 = vrot.lane.b32.xlu1 %v2323_v8, %s2073_s30  ;;  %s1335_s8 = scalar_lea.sflag [#allocation8], %s2257_s6 }
 0x128   : > { %v1658_v10 = vpop.f32.mrf.mxu0 }
 0x195   : > { %v580_v11 = vpop.permute.xlu1 %579  ;;  %v574_v12 = vpop.permute.xlu0 %573 }
 0x196   : > { %v583_v13 = vpack.c.bf16 %v574_v12, %v574_v12  ;;  %v2326_v16 = vpack.c.bf16 %v580_v11, %v580_v11 }
 0x198   : > { %643 = vrot.lane.b32.xlu0 %v583_v13, %s2073_s30 }
 0x199   : > { %v577_v14 = vpop.permute.xlu0 %576  ;;  %v594_v15 = vpop.permute.xlu1 %593 }
 0x19a   : > { %v2328_v17 = vpack.c.bf16 %v577_v14, %v577_v14  ;;  %v600_v18 = vsel %vm595_vm3, %v594_v15, 0 }
 0x19b   : > { %1660 = vmatpush3.bf16.xpose.msra.mxu1 %v600_v18 }
 0x19c   : > { %741 = vrot.lane.b32.xlu0 %v2326_v16, %s2073_s30  ;;  %692 = vrot.lane.b32.xlu1 %v2328_v17, %s2073_s30 }
 0x19d   : > { %1671 = vmatprep.subr.bf16.mxu1 %v2068_v2 }
 0x1a2   : > { %1662 = vmatmul.mubr.msk.bf16.vlgmr.msra.gmra.mxu1 %vm595_vm3, %v2323_v8 }
 0x1a3   : > { %1673 = vmatprep.mubr.msk.bf16.mxu1 %vm2069_vm1, %v2068_v2 }
 0x20a   : > { %v644_v19 = vpop.permute.xlu0 %643 }
 0x20b   : > { %v649_v20 = vsel %vm595_vm3, %v644_v19, 0 }
 0x20c   : > { %1666 = vmatpush3.bf16.xpose.msra.mxu0 %v649_v20 }
 0x20d   : > { %1677 = vmatprep.subr.bf16.mxu0 %v2068_v2 }
 0x20e   : > { %v693_v21 = vpop.permute.xlu1 %692  ;;  %v742_v23 = vpop.permute.xlu0 %741 }
 0x20f   : > { %v698_v22 = vsel %vm595_vm3, %v693_v21, 0  ;;  %v747_v24 = vsel %vm595_vm3, %v742_v23, 0 }
 0x210   : > { %1672 = vmatpush3.bf16.xpose.msra.mxu1 %v698_v22 }
 0x211   : > { %1683 = vmatprep.subr.bf16.mxu1 %v2068_v2 }
 0x213   : > { %1668 = vmatmul.mubr.msk.bf16.vlgmr.msra.gmra.mxu0 %vm595_vm3, %v583_v13 }
 0x214   : > { %1678 = vmatpush3.bf16.xpose.msra.mxu0 %v747_v24  ;;  %1679 = vmatprep.mubr.msk.bf16.mxu0 %vm2069_vm1, %v2068_v2 }
 0x215   : > { %1689 = vmatprep.subr.bf16.mxu0 %v2068_v2 }
 0x217   : > { %1674 = vmatmul.mubr.msk.bf16.vlgmr.msra.gmra.mxu1 %vm595_vm3, %v2328_v17 }
 0x218   : > { %1685 = vmatprep.mubr.msk.bf16.mxu1 %vm2069_vm1, %v2068_v2 }
 0x21b   : > { %1680 = vmatmul.mubr.msk.bf16.vlgmr.msra.gmra.mxu0 %vm595_vm3, %v2326_v16 }
 0x21c   : > { %1691 = vmatprep.mubr.msk.bf16.mxu0 %vm2069_vm1, %v2068_v2 }
 0x262   : > { %v636_v26 = vpop.f32.mrf.mxu1 }
 0x263   : > { %v637_v27 = vadd.f32 %v1587_v25, %v636_v26 }
 0x264   : > { %v1663_v28 = vpop.f32.mrf.mxu1 }
 0x265   : > { %v789_v29 = vsel %vm595_vm3, %v637_v27, -inf }
 0x266   : > { %790 = vmax.xlane.f32.xlu1 %v789_v29  ;;  %v639_v30 = vpop.f32.mrf.mxu1 }
 0x268   : > { %v1664_v31 = vpop.f32.mrf.mxu1 }
 0x2d3   : > { %v685_v32 = vpop.f32.mrf.mxu0 }
 0x2d4   : > { %v686_v33 = vadd.f32 %v1587_v25, %v685_v32 }
 0x2d5   : > { %v1669_v34 = vpop.f32.mrf.mxu0 }
 0x2d6   : > { %v792_v35 = vsel %vm595_vm3, %v686_v33, -inf }
 0x2d7   : > { %v734_v36 = vpop.f32.mrf.mxu1  ;;  %793 = vmax.xlane.f32.xlu0 %v792_v35  ;;  %v688_v37 = vpop.f32.mrf.mxu0 }
 0x2d8   : > { %v735_v38 = vadd.f32 %v1587_v25, %v734_v36  ;;  %v1855_v36 = vld [vmem:[%s2281_s14 + $0x8] sm:$0xff]   ;;  %v1856_v37 = vld [vmem:[%s2281_s14] sm:$0xff]  }
 0x2d9   : > { %v1670_v39 = vpop.f32.mrf.mxu0  ;;  %v1675_v40 = vpop.f32.mrf.mxu1 }
 0x2da   : > { %v795_v41 = vsel %vm595_vm3, %v735_v38, -inf }
 0x2db   : > { %v737_v42 = vpop.f32.mrf.mxu1  ;;  %796 = vmax.xlane.f32.xlu0 %v795_v41  ;;  %v783_v43 = vpop.f32.mrf.mxu0 }
 0x2dc   : > { %v784_v44 = vadd.f32 %v1587_v25, %v783_v43 }
 0x2dd   : > { %v1676_v45 = vpop.f32.mrf.mxu1  ;;  %v1681_v46 = vpop.f32.mrf.mxu0 }
 0x2de   : > { %v798_v47 = vsel %vm595_vm3, %v784_v44, -inf }
 0x2df   : > { %799 = vmax.xlane.f32.xlu1 %v798_v47  ;;  %v786_v48 = vpop.f32.mrf.mxu0 }
 0x2e1   : > { %v1682_v49 = vpop.f32.mrf.mxu0 }
 0x2ef   : > { %v791_v50 = vpop.xlane.xlu1 %790 }
 0x2f0   : > { %890 = vrot.lane.b32.xlu1 %v583_v13, %s2074_s12  ;;  %v801_v51 = vsub.f32 %v637_v27, %v791_v50 }
 0x2f1   : > { %841 = vrot.lane.b32.xlu0 %v2323_v8, %s2074_s12 }
 0x2f2   : > { %v805_v52 = vmul.f32 1.442695, %v801_v51 }
 0x2f4   : > { %1863 = vpow2.f32 %v805_v52 }
 0x301   : > { %v1864_v53 = vpop.eup %1863 }
 0x302   : > { %v813_v54 = vsel %vm595_vm3, %v1864_v53, 0.0 }
 0x310   : > { %814 = vadd.xlane.f32.xlu0 %v813_v54 }
 0x360   : > { %v794_v55 = vpop.xlane.xlu0 %793 }
 0x361   : > { %v802_v56 = vsub.f32 %v686_v33, %v794_v55 }
 0x363   : > { %v807_v57 = vmul.f32 1.442695, %v802_v56 }
 0x364   : > { %v797_v58 = vpop.xlane.xlu0 %796 }
 0x365   : > { %1865 = vpow2.f32 %v807_v57  ;;  %v803_v59 = vsub.f32 %v735_v38, %v797_v58  ;;  %v1056_v57 = vlaneseq }
 0x367   : > { %v809_v60 = vmul.f32 1.442695, %v803_v59  ;;  %v2412_v58 = vshrl.u32 %v1056_v57, 7 }
 0x368   : > { %v842_v61 = vpop.permute.xlu0 %841  ;;  %v800_v62 = vpop.xlane.xlu1 %799 }
 0x369   : > { %1867 = vpow2.f32 %v809_v60  ;;  %v848_v63 = vsel %vm846_vm4, %v842_v61, 0  ;;  %v804_v0 = vsub.f32 %v784_v44, %v800_v62  ;;  %v1058_v59 = vsub.s32 0, %v2412_v58  ;;  %v2416_v60 = vld [vmem:[%s2301_s18] sm:$0x3f]  ;;  %s2609_s18 = sld [smem:[#allocation32_spill]] }
 0x36a   : > { %1684 = vmatpush3.bf16.msra.mxu1 %v848_v63 }
 0x36b   : > { %v811_v1 = vmul.f32 1.442695, %v804_v0  ;;  %1695 = vmatprep.subr.bf16.mxu1 %v2068_v2  ;;  %v1059_v61 = vrot.slane %v2416_v60, %v1058_v59 }
 0x36c   : > { %v891_v3 = vpop.permute.xlu1 %890 }
 0x36d   : > { %1869 = vpow2.f32 %v811_v1  ;;  %v896_v5 = vsel %vm846_vm4, %v891_v3, 0 }
 0x36e   : > { %1690 = vmatpush3.bf16.msra.mxu0 %v896_v5 }
 0x36f   : > { %1701 = vmatprep.subr.bf16.mxu0 %v2068_v2  ;;  %s2610_s0 = smov %s2609_s18  ;;  %s2454_s2 = scalar_lea.hbm %s2609_s18, %s1614_s20 }
 0x372   : > { %v1866_v6 = vpop.eup %1865 }
 0x373   : > { %v816_v7 = vsel %vm595_vm3, %v1866_v6, 0.0 }
 0x374   : > { %817 = vadd.xlane.f32.xlu1 %v816_v7 }
 0x376   : > { %v1868_v8 = vpop.eup %1867 }
 0x377   : > { %v819_v9 = vsel %vm595_vm3, %v1868_v8, 0.0 }
 0x378   : > { %820 = vadd.xlane.f32.xlu0 %v819_v9 }
 0x37a   : > { %v1870_v10 = vpop.eup %1869 }
 0x37b   : > { %v822_v11 = vsel %vm595_vm3, %v1870_v10, 0.0 }
 0x37c   : > { %823 = vadd.xlane.f32.xlu1 %v822_v11 }
 0x38d   : > { %938 = vrot.lane.b32.xlu1 %v2328_v17, %s2074_s12 }
 0x38e   : > { %986 = vrot.lane.b32.xlu0 %v2326_v16, %s2074_s12 }
 0x399   : > { %v815_v12 = vpop.xlane.xlu0 %814 }
 0x39a   : > { %1871 = vrcp.f32 %v815_v12  ;;  %v1857_v12 = vld [vmem:[%s2286_s9 + $0x8] sm:$0xff]  }
 0x3a7   : > { %v1872_v13 = vpop.eup %1871 }
 0x3a8   : > { %v829_v14 = vmul.f32 %v1872_v13, %v1864_v53  ;;  %v1858_v13 = vld [vmem:[%s2286_s9] sm:$0xff]   ;;  %s1365_s9 = sshll.u32 %s2305_s13, 4  ;;  %s2449_s9 = int_to_ptr.vmem [resolvable:$true] %s1365_s9 }
 0x3a9   : > { %s1915_s30 = scalar_lea.vmem %s2449_s9, 512  ;;  %p1922_p9 = scmp.lt.s32.totalorder %s2449_s9, %s1920_s19 }
 0x3aa   : > { %833 = vst.msk [vmem:[%s2305_s13] sm:$0xff] %vm595_vm3, %v829_v14  ;;  %v837_v15 = vpack.c.bf16 %v829_v14, %v829_v14  ;;  %v1860_v14 = vld [vmem:[%s2291_s11 + $0x10] sm:$0xff]   ;;  %p1916_p5 = scmp.ne.s32.totalorder %s2449_s9, %s1915_s30 }
 0x3ac   : > { %1686 = vmatmul.mubr.msk.bf16.vlgmr.msra.gmra.mxu1 %vm595_vm3, %v837_v15  ;;  %p1917_p6 = pnand %p1916_p5, %p2213_p12 }
 0x3ad   : > { %1697 = vmatprep.mubr.msk.bf16.mxu1 %vm2069_vm1, %v2068_v2 }
 0x3ae   : > { %p1918_p8 = pneg %p1917_p6 }
 0x3fd   : > { %v818_v18 = vpop.xlane.xlu1 %817 }
 0x3fe   : > { %1873 = vrcp.f32 %v818_v18 }
 0x401   : > { %v821_v19 = vpop.xlane.xlu0 %820 }
 0x402   : > { %1875 = vrcp.f32 %v821_v19 }
 0x405   : > { %v824_v17 = vpop.xlane.xlu1 %823  ;;  %v987_v23 = vpop.permute.xlu0 %986 }
 0x406   : > { %1877 = vrcp.f32 %v824_v17  ;;  %v992_v26 = vsel %vm846_vm4, %v987_v23, 0  ;;  %v1139_v23 = vsub.s32 1, %v2412_v58 }
 0x409   : > { %v939_v16 = vpop.permute.xlu1 %938 }
 0x40a   : > { %v944_v20 = vsel %vm846_vm4, %v939_v16, 0 }
 0x40b   : > { %v1874_v21 = vpop.eup %1873  ;;  %1696 = vmatpush3.bf16.msra.mxu1 %v944_v20 }
 0x40c   : > { %v830_v22 = vmul.f32 %v1874_v21, %v1866_v6  ;;  %1707 = vmatprep.subr.bf16.mxu1 %v2068_v2 }
 0x40e   : > { %834 = vst.msk [vmem:[%s2305_s13 + $0x8] sm:$0xff] %vm595_vm3, %v830_v22  ;;  %v838_v24 = vpack.c.bf16 %v830_v22, %v830_v22 }
 0x40f   : > { %v1876_v25 = vpop.eup %1875 }
 0x410   : > { %1692 = vmatmul.mubr.msk.bf16.vlgmr.msra.gmra.mxu0 %vm595_vm3, %v838_v24  ;;  %v831_v27 = vmul.f32 %v1876_v25, %v1868_v8  ;;  %v1144_v24 = vsub.s32 2, %v2412_v58  ;;  %v1140_v25 = vrot.slane %v2416_v60, %v1139_v23 }
 0x411   : > { %1702 = vmatpush3.bf16.msra.mxu0 %v992_v26  ;;  %1703 = vmatprep.mubr.msk.bf16.mxu0 %vm2069_vm1, %v2068_v2 }
 0x412   : > { %835 = vst.msk [vmem:[%s2305_s13 + $0x10] sm:$0xff] %vm595_vm3, %v831_v27  ;;  %v839_v28 = vpack.c.bf16 %v831_v27, %v831_v27  ;;  %1715 = vmatprep.subr.bf16.mxu0 %v2068_v2 }
 0x413   : > { %v1878_v29 = vpop.eup %1877 }
 0x414   : > { %1698 = vmatmul.mubr.msk.bf16.vlgmr.msra.gmra.mxu1 %vm595_vm3, %v839_v28  ;;  %v832_v30 = vmul.f32 %v1878_v29, %v1870_v10  ;;  %v1145_v28 = vrot.slane %v2416_v60, %v1144_v24 }
 0x415   : > { %1711 = vmatprep.mubr.msk.bf16.mxu1 %vm2069_vm1, %v2068_v2  ;;  %1708 = vmatpush3.bf16.msra.mxu1 %v1855_v36 }
 0x416   : > { %836 = vst.msk [vmem:[%s2305_s13 + $0x18] sm:$0xff] %vm595_vm3, %v832_v30  ;;  %v840_v31 = vpack.c.bf16 %v832_v30, %v832_v30  ;;  %1709 = vmatprep.subr.bf16.mxu1 %v2068_v2  ;;  %s1921_s13 = scalar_lea.vmem %s1920_s19, 1024 }
 0x417   : > { %p1923_p10 = scmp.lt.s32.totalorder %s1921_s13, %s1915_s30 }
 0x418   : > { %1704 = vmatmul.mubr.msk.bf16.vlgmr.msra.gmra.mxu0 %vm595_vm3, %v840_v31 }
 0x419   : > { %1719 = vmatprep.mubr.msk.bf16.mxu0 %vm2069_vm1, %v2068_v2  ;;  %1710 = vmatpush3.bf16.msra.mxu1 %v1856_v37  ;;  %p1924_p11 = por %p1923_p10, %p1922_p9 }
 0x41a   : > { %1723 = vmatprep.subr.bf16.mxu1 %v2068_v2  ;;  %1716 = vmatpush3.bf16.msra.mxu0 %v1857_v12 }
 0x41b   : > { %1717 = vmatprep.subr.bf16.mxu0 %v2068_v2  ;;  %p1925_p13 = pnand %p1924_p11, %p1918_p8 }
 0x41e   : > { %1718 = vmatpush3.bf16.msra.mxu0 %v1858_v13 }
 0x46c   : > { %v884_v32 = vpop.f32.mrf.mxu1 }
 0x46e   : > { %v1687_v33 = vpop.f32.mrf.mxu1 }
 0x46f   : > { %v1862_v33 = vld [vmem:[%s2291_s11] sm:$0xff]  }
 0x470   : > { %v887_v34 = vpop.f32.mrf.mxu1 }
 0x471   : > { %v1599_v34 = vld [vmem:[%s499_s26] ss:$0 sm:$0xff] }
 0x472   : > { %v1688_v35 = vpop.f32.mrf.mxu1 }
 0x4d0   : > { %v932_v38 = vpop.f32.mrf.mxu0 }
 0x4d1   : > { %1035 = vrot.lane.b32.xlu1 %v932_v38, %s2075_s7 }
 0x4d2   : > { %v1693_v39 = vpop.f32.mrf.mxu0 }
 0x4d4   : > { %v935_v40 = vpop.f32.mrf.mxu0  ;;  %v980_v41 = vpop.f32.mrf.mxu1 }
 0x4d5   : > { %1039 = vrot.lane.b32.xlu0 %v980_v41, %s2076_s24 }
 0x4d6   : > { %v1694_v42 = vpop.f32.mrf.mxu0  ;;  %v1699_v43 = vpop.f32.mrf.mxu1 }
 0x4d7   : > { %v1226_v42 = vsub.s32 3, %v2412_v58 }
 0x4d8   : > { %v983_v44 = vpop.f32.mrf.mxu1  ;;  %v1028_v45 = vpop.f32.mrf.mxu0 }
 0x4d9   : > { %1043 = vrot.lane.b32.xlu1 %v1028_v45, %s2077_s21 }
 0x4da   : > { %v1700_v46 = vpop.f32.mrf.mxu1  ;;  %v1705_v47 = vpop.f32.mrf.mxu0 }
 0x4dc   : > { %v1031_v48 = vpop.f32.mrf.mxu0 }
 0x4de   : > { %v1706_v49 = vpop.f32.mrf.mxu0 }
 0x543   : > { %v1036_v50 = vpop.permute.xlu1 %1035 }
 0x544   : > { %v1046_v52 = vsel %vm595_vm3, %v884_v32, %v1036_v50  ;;  %v1861_v32 = vld [vmem:[%s2291_s11 + $0x8] sm:$0xff]  }
 0x547   : > { %v1040_v51 = vpop.permute.xlu0 %1039 }
 0x548   : > { %v1048_v53 = vsel %vm1047_vm5, %v1046_v52, %v1040_v51 }
 0x54b   : > { %v1044_v54 = vpop.permute.xlu1 %1043 }
 0x54c   : > { %v1050_v55 = vsel %vm1049_vm6, %v1048_v53, %v1044_v54 }
 0x54d   : > { %v1051_v56 = vpack.c.bf16 %v1050_v55, %v1050_v55 }
 0x54f   : > { %1712 = vmatmul.mubr.msk.bf16.vlgmr.msra.gmra.mxu1 %vm527_vm2, %v1051_v56 }
 0x550   : > { %1731 = vmatprep.mubr.msk.bf16.mxu1 %vm2069_vm1, %v2068_v2 }
 0x60f   : > { %v1109_v62 = vpop.f32.mrf.mxu1 }
 0x610   : > { %v1110_v63 = vadd.f32 %v1109_v62, %v1059_v61 }
 0x611   : > { %v1713_v0 = vpop.f32.mrf.mxu1 }
 0x612   : > { %v1115_v1 = vadd.f32 %v1110_v63, %v2312_v4  ;;  %v1859_v4 = vld [vmem:[%s2291_s11 + $0x18] sm:$0xff]  }
 0x613   : > { %v1112_v3 = vpop.f32.mrf.mxu1  ;;  %1724 = vmatpush3.bf16.msra.mxu1 %v1859_v4 }
 0x614   : > { %v1116_v5 = vsel %vm527_vm2, %v1115_v1, 0.0  ;;  %1725 = vmatprep.subr.bf16.mxu1 %v2068_v2 }
 0x615   : > { %1117 = vadd.xlane.f32.xlu0 %v1116_v5  ;;  %v1714_v6 = vpop.f32.mrf.mxu1 }
 0x617   : > { %1726 = vmatpush3.bf16.msra.mxu1 %v1860_v14 }
 0x618   : > { %1727 = vmatprep.subr.bf16.mxu1 %v2068_v2 }
 0x61b   : > { %1728 = vmatpush3.bf16.msra.mxu1 %v1861_v32 }
 0x61c   : > { %1729 = vmatprep.subr.bf16.mxu1 %v2068_v2  ;;  %v1227_v2 = vrot.slane %v2416_v60, %v1226_v42 }
 0x61f   : > { %1730 = vmatpush3.bf16.msra.mxu1 %v1862_v33 }
 0x69e   : > { %v1118_v7 = vpop.xlane.xlu0 %1117 }
 0x69f   : > { %v1120_v8 = vmul.f32 0.03125, %v1118_v7 }
 0x6a1   : > { %v1121_v9 = vsub.f32 %v1115_v1, %v1120_v8 }
 0x6a3   : > { %v1122_v10 = vmul.f32 %v1121_v9, %v1121_v9 }
 0x6a5   : > { %v1123_v11 = vsel %vm527_vm2, %v1122_v10, 0.0 }
 0x6a6   : > { %1124 = vadd.xlane.f32.xlu1 %v1123_v11 }
 0x72f   : > { %v1125_v15 = vpop.xlane.xlu1 %1124 }
 0x730   : > { %v1126_v18 = vmul.f32 0.032258064, %v1125_v15 }
 0x732   : > { %1879 = vrsqrt.f32 %v1126_v18  ;;  %vm1129_vm7 = vcmp.eq.f32.partialorder %v1126_v18, inf  ;;  %v1132_v16 = vand.u32 2147483648, %v1126_v18  ;;  %vm1131_vm8 = vcmp.eq.f32.partialorder %v1126_v18, 0.0 }
 0x73f   : > { %v1880_v19 = vpop.eup %1879 }
 0x740   : > { %v1128_v17 = vmul.f32 %v1880_v19, %v1126_v18 }
 0x742   : > { %v1130_v20 = vsel %vm1129_vm7, %v1126_v18, %v1128_v17 }
 0x743   : > { %v1133_v21 = vsel %vm1131_vm8, %v1132_v16, %v1130_v20 }
 0x744   : > { %v1134_v22 = vadd.f32 0.001, %v1133_v21 }
 0x746   : > { %1881 = vrcp.f32 %v1134_v22 }
 0x753   : > { %v1882_v26 = vpop.eup %1881 }
 0x754   : > { %v1136_v27 = vmul.f32 %v1882_v26, %v1121_v9 }
 0x756   : > { %v1141_v29 = vmul.f32 %v1140_v25, %v1136_v27 }
 0x758   : > { %v1146_v30 = vadd.f32 %v1145_v28, %v1141_v29 }
 0x75a   : > { %v1147_v31 = vpack.c.bf16 %v1146_v30, %v1146_v30 }
 0x75c   : > { %1720 = vmatmul.mubr.msk.bf16.vlgmr.msra.gmra.mxu0 %vm527_vm2, %v1147_v31 }
 0x81c   : > { %v1208_v35 = vpop.f32.mrf.mxu0 }
 0x81d   : > { %v1209_v36 = vadd.f32 %v1599_v34, %v1208_v35 }
 0x81e   : > { %v1721_v37 = vpop.f32.mrf.mxu0 }
 0x81f   : > { %v1214_v38 = vmax.f32 %v1209_v36, 0.0 }
 0x820   : > { %v1211_v39 = vpop.f32.mrf.mxu0 }
 0x821   : > { %v1215_v40 = vpack.c.bf16 %v1214_v38, %v1214_v38 }
 0x822   : > { %v1722_v41 = vpop.f32.mrf.mxu0 }
 0x823   : > { %1732 = vmatmul.mubr.msk.bf16.vlgmr.msra.gmra.mxu1 %vm1252_vm9, %v1215_v40 }
 0x8e3   : > { %v1290_v43 = vpop.f32.mrf.mxu1 }
 0x8e4   : > { %v1291_v44 = vadd.f32 %v1290_v43, %v1227_v2 }
 0x8e5   : > { %v1733_v45 = vpop.f32.mrf.mxu1 }
 0x8e6   : > { %v1296_v46 = vadd.f32 %v1291_v44, %v1146_v30 }
 0x8e7   : > { %v1293_v47 = vpop.f32.mrf.mxu1 }
 0x8e8   : > { %v1297_v48 = vsel %vm527_vm2, %v1296_v46, 0.0 }
 0x8e9   : > { %1298 = vadd.xlane.f32.xlu0 %v1297_v48  ;;  %v1734_v49 = vpop.f32.mrf.mxu1 }
 0x972   : > { %v1299_v50 = vpop.xlane.xlu0 %1298 }
 0x973   : > { %v1300_v51 = vmul.f32 0.03125, %v1299_v50 }
 0x975   : > { %v1301_v52 = vsub.f32 %v1296_v46, %v1300_v51 }
 0x977   : > { %v1302_v53 = vmul.f32 %v1301_v52, %v1301_v52 }
 0x979   : > { %v1303_v54 = vsel %vm527_vm2, %v1302_v53, 0.0 }
 0x97a   : > { %1304 = vadd.xlane.f32.xlu0 %v1303_v54 }
 0x97b   : > { %1928 = shalt.err (!%p1925_p13)
}
 0x97c   : > { %s1929_s23 = scalar_lea.hbm %s2454_s2, 512  ;;  %s1933_s21 = scalar_lea.hbm %s2610_s0, 2048 }
 0x97d   : > { %p1930_p0 = scmp.ne.s32.totalorder %s2454_s2, %s1929_s23  ;;  %p1934_p2 = scmp.lt.s32.totalorder %s2454_s2, %s2610_s0 }
 0x97e   : > { %p1935_p4 = scmp.lt.s32.totalorder %s1933_s21, %s1929_s23 }
 0x97f   : > { %p1931_p3 = pnand %p1930_p0, %p2213_p12 }
 0x980   : > { %p1936_p7 = por %p1935_p4, %p1934_p2 }
 0x981   : > { %p1932_p1 = pneg %p1931_p3 }
 0x983   : > { %p1937_p5 = pnand %p1936_p7, %p1932_p1 }
 0x985   : > { %1940 = shalt.err (!%p1937_p5)
}
 0x986   : > { %s2079_s22 = smov 128   ;;  %v1319_v1 = vsub.s32 4, %v2412_v58  ;;  %s1610_s29 = sshll.u32 %s2049_s15, 1  ;;  %v1324_v3 = vsub.s32 5, %v2412_v58 }
 0x987   : > { %1738 = dma.vmem_to_hbm [thread:$0]  (%p2213_p12), %s2449_s9, 512, %s2454_s2, %s1335_s8, %s2079_s22, %s2079_s22, %s2075_s7  }
 0x988   : > { %v1320_v5 = vrot.slane %v2416_v60, %v1319_v1  ;;  %s1346_s7 = sadd.s32 %s2053_s16, %s1610_s29  ;;  %v1325_v8 = vrot.slane %v2416_v60, %v1324_v3  ;;  %s1350_s27 = sshll.u32 %s2303_s3, 4  ;;  %s1351_s27 = int_to_ptr.vmem [resolvable:$true] %s1350_s27 }
 0x989   : > { %s1611_s25 = sshll.u32 %s1346_s7, 7  ;;  %s2611_s26 = sld [smem:[#allocation31_spill]] }
 0x98a   : > { %s1330_s15 = scalar_lea.sflag [#allocation5], %s2257_s6  ;;  %s1941_s16 = scalar_lea.vmem %s1351_s27, 128 }
 0x98b   : > { %p1942_p6 = scmp.ne.s32.totalorder %s1351_s27, %s1941_s16  ;;  %s2080_s18 = smov [#allocation6]  }
 0x98c   : > { %s1945_s2 = sshll.u32 %s2080_s18, 4  ;;  %s1946_s2 = int_to_ptr.vmem [resolvable:$false] %s1945_s2 }
 0x98d   : > { %p1943_p8 = pnand %p1942_p6, %p2213_p12  ;;  %s1947_s8 = scalar_lea.vmem %s1946_s2, 256 }
 0x98e   : > { %p1948_p10 = scmp.lt.s32.totalorder %s1351_s27, %s1946_s2  ;;  %p1949_p11 = scmp.lt.s32.totalorder %s1947_s8, %s1941_s16 }
 0x98f   : > { %s2490_s17 = scalar_lea.hbm %s2611_s26, %s1611_s25  ;;  %p1944_p9 = pneg %p1943_p8 }
 0x990   : > { %p1950_p13 = por %p1949_p11, %p1948_p10 }
 0x992   : > { %p1951_p0 = pnand %p1950_p13, %p1944_p9 }
 0xa03   : > { %v1305_v55 = vpop.xlane.xlu0 %1304 }
 0xa04   : > { %v1306_v56 = vmul.f32 0.032258064, %v1305_v55 }
 0xa06   : > { %1883 = vrsqrt.f32 %v1306_v56  ;;  %vm1309_vm10 = vcmp.eq.f32.partialorder %v1306_v56, inf  ;;  %v1312_v61 = vand.u32 2147483648, %v1306_v56  ;;  %vm1311_vm11 = vcmp.eq.f32.partialorder %v1306_v56, 0.0 }
 0xa13   : > { %v1884_v57 = vpop.eup %1883 }
 0xa14   : > { %v1308_v59 = vmul.f32 %v1884_v57, %v1306_v56 }
 0xa16   : > { %v1310_v62 = vsel %vm1309_vm10, %v1306_v56, %v1308_v59 }
 0xa17   : > { %v1313_v63 = vsel %vm1311_vm11, %v1312_v61, %v1310_v62 }
 0xa18   : > { %v1314_v0 = vadd.f32 0.001, %v1313_v63 }
 0xa1a   : > { %1885 = vrcp.f32 %v1314_v0 }
 0xa27   : > { %v1886_v6 = vpop.eup %1885 }
 0xa28   : > { %v1316_v7 = vmul.f32 %v1886_v6, %v1301_v52 }
 0xa2a   : > { %v1321_v9 = vmul.f32 %v1320_v5, %v1316_v7 }
 0xa2c   : > { %v1326_v10 = vadd.f32 %v1325_v8, %v1321_v9 }
 0xa2e   : > { %1327 = vst.msk [vmem:[%s2303_s3] sm:$0xff] %vm527_vm2, %v1326_v10  ;;  %1328 = vst.msk [vmem:[#allocation2] sm:$0xff] %vm527_vm2, %v1326_v10 }
 0xa2f   : > { %1954 = shalt.err (!%p1951_p0)
}
 0xa30   : > { %s1955_s3 = scalar_lea.hbm %s2490_s17, 128  ;;  %s1959_s10 = scalar_lea.hbm %s2611_s26, 512 }
 0xa31   : > { %p1956_p3 = scmp.ne.s32.totalorder %s2490_s17, %s1955_s3  ;;  %p1960_p4 = scmp.lt.s32.totalorder %s2490_s17, %s2611_s26 }
 0xa32   : > { %p1961_p7 = scmp.lt.s32.totalorder %s1959_s10, %s1955_s3 }
 0xa33   : > { %p1957_p1 = pnand %p1956_p3, %p2213_p12 }
 0xa34   : > { %p1962_p5 = por %p1961_p7, %p1960_p4 }
 0xa35   : > { %p1958_p2 = pneg %p1957_p1 }
 0xa37   : > { %p1963_p6 = pnand %p1962_p5, %p1958_p2 }
 0xa39   : > { %1966 = shalt.err (!%p1963_p6)
}
 0xa3a   : > { %1737 = dma.vmem_to_hbm [thread:$0]  (%p2213_p12), %s1351_s27, 128, %s2490_s17, %s1330_s15  }
 0xa3b PF: > { %s2612_s23 = sld [smem:[#allocation19_spill]] }
 0xa3c   : > { %s2613_s12 = sld [smem:[#allocation12_spill]] }
 0xa3d   : > { %s2614_s24 = sld [smem:[#allocation25_spill]] }
 0xa41   : > { %p1753_p8 = scmp.ge.s32.totalorder %s2612_s23, 2 }
 0xa42   : > { %s1380_s21 = sand.u32 1, %s2613_s12  }
 0xa43   : > { %p2615_p9 = scmp.ne.s32.totalorder %s2614_s24, 0  ;;  %s1381_s14 = scalar_lea.sflag [#allocation5], %s1380_s21 }
 0xa45   : > { %p1746_p10 = pnand %p1753_p8, %p2615_p9 }
 0xa47   : > { %p1747_p11 = pneg %p1746_p10 }
 0xa49   : > { %2016 = dma.done.wait (%p1747_p11), %s1381_s14, 128  }
 0xa4a   : > { %2018 = vsyncadd (%p1747_p11), %s1381_s14, 4294967168  ;;  %s1390_s28 = scalar_lea.sflag [#allocation8], %s1380_s21 }
 0xa4b   : > { %2020 = dma.done.wait (%p1747_p11), %s1390_s28, 512  }
 0xa4c   : > { %2022 = vsyncadd (%p1747_p11), %s1390_s28, 4294966784  ;;  %s29_s19 = sadd.s32 1, %s2612_s23   ;;  %s2616_s30 = sld [smem:[#allocation13_spill]] }
 0xa4d   : > { %p26_p13 = scmp.ge.s32.totalorder %s29_s19, 6   ;;  %s2617_s10 = sld [smem:[#allocation14_spill]] }
 0xa4e   : > { %s2618_s11 = sld [smem:[#allocation24_spill]] }
 0xa4f   : > { %s2619_s12 = sld [smem:[#allocation15_spill]] }
 0xa50   : > { %s2620_s13 = sld [smem:[#allocation16_spill]] }
 0xa51   : > { %s2621_s14 = sld [smem:[#allocation23_spill]]  ;;  %28 = sbr.rel (!%p26_p13) target bundleno = 19 (0x13), region = 139 }
 0xa52   : > { %s2622_s15 = sld [smem:[#allocation17_spill]] }
 0xa53   : > { %s2623_s16 = sld [smem:[#allocation18_spill]] }
 0xa54   : > { %s2624_s17 = sld [smem:[#allocation20_spill]] }
 0xa55   : > { %s2625_s18 = sld [smem:[#allocation21_spill]] }
 0xa56   :  { %1395 = vsyncpa [#allocation4], 1 }
 0xa57   :  { %1397 = vsyncpa [#allocation4 + $0x1], 1 }
 0xa58   :  { %1398 = vsyncpa [#allocation5], 1 }
 0xa59   :  { %1400 = vsyncpa [#allocation5 + $0x1], 1 }
 0xa5a   :  { %1401 = vsyncpa [#allocation8], 1 }
 0xa5b   :  { %1403 = vsyncpa [#allocation8 + $0x1], 1 }

</bundles_post_ra>
